<compile_context>
chip_gen: v5e
topology: v5e:2x2
jax: 0.10.0
libtpu: 0.0.40
codegen_flags: <defaults>
</compile_context>

<pallas_src>
import math

import jax
import jax.numpy as jnp
from jax import lax
from jax.experimental import pallas as pl
from jax.experimental.pallas import tpu as pltpu


# ----------------------------------------------------------------------------
# Kernel: logits head (pre 1x1 conv + ReLU + proj 1x1 conv), transpose-fused.
# x block is [1, C, tile_hw] f32; weights pre-transposed so the compute is
#   h  = relu(w1^T @ x + b1)   : [Ch,    tile_hw]
#   lg =       w2^T @ h + b2   : [A_pad, tile_hw]
# Output slab [B, A_pad, HW] is lane-dense (tile_hw on the lane axis) and
# sublane-aligned (A_pad multiple of 8).
# ----------------------------------------------------------------------------
def logits_kernel(x_ref, w1t_ref, b1_ref, w2t_ref, b2_ref, out_ref):
    x = x_ref[0].astype(jnp.bfloat16)                                   # f32->bf16 in-kernel (VPU)
    h = jnp.dot(w1t_ref[...], x, preferred_element_type=jnp.float32)    # [Ch, thw] f32 acc
    h = jnp.maximum(h + b1_ref[...], 0.0)                               # f32 bias + ReLU
    h = h.astype(jnp.bfloat16)
    lg = jnp.dot(w2t_ref[...], h, preferred_element_type=jnp.float32)   # [A_pad, thw]
    out_ref[0] = lg + b2_ref[...]


_VMEM_TILE_BUDGET = 24 * 1024 * 1024   # double-buffered (in + out) tile bytes
_VMEM_LIMIT = 32 * 1024 * 1024         # scoped VMEM; safe on v5e/v6e/v7x


def _pick_tile_hw(hw, c, a_pad, batch):
    # Bytes per hw position, double-buffered: f32 input (C rows) + f32 output (A_pad rows).
    per_pos = 2 * 4 * (c + a_pad)
    max_tile = max(128, _VMEM_TILE_BUDGET // per_pos)
    if hw <= max_tile:
        tile = hw                              # full-dim block (no 128-divisibility needed)
    else:
        tile = (max_tile // 128) * 128         # lane-aligned; ragged tail via cdiv grid
    # Keep both megacore TCs busy when a single block would cover everything.
    if batch == 1 and tile >= hw and hw > 256:
        tile = max(128, ((pl.cdiv(hw, 2) + 127) // 128) * 128)
    return tile


def run_logits(x_bchw_f32, w1t, b1c, w2t, b2c, *, tile_hw=None):
    B, C, HW = x_bchw_f32.shape
    Ch = w1t.shape[0]
    A_pad = w2t.shape[0]
    if tile_hw is None:
        tile_hw = _pick_tile_hw(HW, C, A_pad, B)
    n_hw = pl.cdiv(HW, tile_hw)
    return pl.pallas_call(
        logits_kernel,
        out_shape=jax.ShapeDtypeStruct((B, A_pad, HW), jnp.float32),
        grid_spec=pltpu.PrefetchScalarGridSpec(
            num_scalar_prefetch=0,
            grid=(B, n_hw),
            in_specs=[
                pl.BlockSpec((1, C, tile_hw), lambda b, j: (b, 0, j)),
                pl.BlockSpec((Ch, C), lambda b, j: (0, 0)),
                pl.BlockSpec((Ch, 1), lambda b, j: (0, 0)),
                pl.BlockSpec((A_pad, Ch), lambda b, j: (0, 0)),
                pl.BlockSpec((A_pad, 1), lambda b, j: (0, 0)),
            ],
            out_specs=pl.BlockSpec((1, A_pad, tile_hw), lambda b, j: (b, 0, j)),
        ),
        compiler_params=pltpu.CompilerParams(
            dimension_semantics=("parallel", "parallel"),
            vmem_limit_bytes=_VMEM_LIMIT),
    )(x_bchw_f32, w1t, b1c, w2t, b2c)


# ----------------------------------------------------------------------------
# Anchor generation (grid anchors, A = len(scales)*len(ratios) per cell).
# Ordering matches the torch flatten: anchor_id = (h*W + w)*A + a.
# ----------------------------------------------------------------------------
def make_anchors(fH, fW, stride, scales, ratios):
    ws, hs = [], []
    for s in scales:
        for r in ratios:
            ws.append(s * math.sqrt(r))
            hs.append(s / math.sqrt(r))
    ws = jnp.asarray(ws, jnp.float32)                  # [A]
    hs = jnp.asarray(hs, jnp.float32)                  # [A]
    ys = (jnp.arange(fH, dtype=jnp.float32) + 0.5) * stride
    xs = (jnp.arange(fW, dtype=jnp.float32) + 0.5) * stride
    cy, cx = jnp.meshgrid(ys, xs, indexing="ij")       # [H, W]
    cx = cx.reshape(-1, 1)
    cy = cy.reshape(-1, 1)                             # [HW, 1]
    x1 = cx - ws / 2.0
    y1 = cy - hs / 2.0
    x2 = cx + ws / 2.0
    y2 = cy + hs / 2.0
    anchors = jnp.stack([x1, y1, x2, y2], axis=-1)     # [HW, A, 4], xyxy
    return anchors.reshape(-1, 4)                      # [HW*A, 4]


# ----------------------------------------------------------------------------
# Forward: mirrors AnchorSelector.forward for the inference path.
# ----------------------------------------------------------------------------
def anchor_selector_forward(feat_map, params, *, rel_thr, stride=8.0,
                            scales=(32.0, 64.0), ratios=(0.5, 2.0)):
    B, C, H, W = feat_map.shape
    Ch = params["w1"].shape[1]
    A = params["w2"].shape[1]                          # num_cell_anchors
    HW = H * W
    num_anchors = HW * A
    assert rel_thr <= num_anchors
    A_pad = -(-A // 8) * 8                             # sublane-aligned projection rows

    feat3 = feat_map.reshape(B, C, HW)                 # free reshape; stays NCHW f32
    w1t = params["w1"].T.astype(jnp.bfloat16)          # [Ch, C]   (tiny one-off casts)
    b1c = params["b1"].reshape(-1, 1).astype(jnp.float32)   # [Ch, 1]
    w2t = params["w2"].T.astype(jnp.bfloat16)          # [A, Ch]
    b2c = params["b2"].reshape(-1, 1).astype(jnp.float32)   # [A, 1]
    if A_pad != A:
        w2t = jnp.concatenate(
            [w2t, jnp.zeros((A_pad - A, Ch), jnp.bfloat16)], axis=0)
        # Large-negative bias on the pad rows so they can never win top-k.
        b2c = jnp.concatenate(
            [b2c, jnp.full((A_pad - A, 1), jnp.finfo(jnp.float32).min)], axis=0)

    # Logits hot path (Pallas kernel): [B, A_pad, HW] f32, lane-dense output.
    logits_pad = run_logits(feat3, w1t, b1c, w2t, b2c)

    # 'rel' selection: per-batch top-k directly on the A-major layout (no
    # transpose pass); remap indices to the torch A-fastest encoding afterwards.
    # TODO(synk): top-k has no clean Pallas equivalent; done with lax.top_k.
    flat = logits_pad.reshape(B, A_pad * HW)
    _, idx = lax.top_k(flat, rel_thr)                  # [B, rel_thr], A-major ids
    a_ids = idx // HW
    hw_ids = idx % HW
    rel_ids = hw_ids * A + a_ids                       # torch anchor id within batch
    sel_ids = (rel_ids + num_anchors * jnp.arange(B)[:, None]).reshape(-1)

    anchors = make_anchors(H, W, stride, scales, ratios)     # [num_anchors, 4]

    batch_ids = sel_ids // num_anchors
    # Exactly rel_thr selections per batch entry by construction of top-k.
    cum_feats_batch = jnp.arange(B + 1, dtype=jnp.int32) * rel_thr

    feat_ids = sel_ids // A                            # = b*HW + h*W + w

    # feat_sel_type == 'map': gather the few selected rows (B*rel_thr) straight
    # from the NCHW map in plain JAX — avoids a [B*HW, C] channels-last copy.
    b_sel = feat_ids // HW
    hw_sel = feat_ids % HW
    sel_feats = feat3[b_sel, :, hw_sel]                # [num_sels, C]

    anchor_ids = sel_ids % num_anchors
    sel_boxes = anchors[anchor_ids]                    # [num_sels, 4]

    storage_dict = {
        "anchors": anchors,
        "sel_ids": sel_ids,
        "cum_feats_batch": cum_feats_batch,
        "feat_ids": feat_ids,
        "sel_feats": sel_feats,
        "sel_boxes": sel_boxes,
        "sel_box_batch_ids": batch_ids,
        # Torch's internal logit_map (NCHW conv output); kept for inspection/tests.
        "logit_map": logits_pad[:, :A, :].reshape(B, A, H, W),
    }
    return storage_dict


if __name__ == "__main__":
    # Small, module-consistent shapes.
    B, C, H, W = 2, 32, 16, 16          # batch, feat_size, fH, fW
    HIDDEN = 32                         # pre_logits out_channels
    A = 4                               # num_cell_anchors = 2 scales x 2 ratios
    REL_THR = 16                        # sel_attrs['rel_thr']
    INIT_PROB = 0.01

    key = jax.random.PRNGKey(0)
    k_x, k_w1, k_w2 = jax.random.split(key, 3)

    feat_map = jax.random.normal(k_x, (B, C, H, W), dtype=jnp.float32)

    init_logits_bias = -math.log((1.0 - INIT_PROB) / INIT_PROB)
    params = {
        "w1": 0.1 * jax.random.normal(k_w1, (C, HIDDEN), dtype=jnp.float32),
        "b1": jnp.zeros((HIDDEN,), dtype=jnp.float32),
        "w2": 0.1 * jax.random.normal(k_w2, (HIDDEN, A), dtype=jnp.float32),
        "b2": jnp.full((A,), init_logits_bias, dtype=jnp.float32),
    }

    out = anchor_selector_forward(feat_map, params, rel_thr=REL_THR)
    out = jax.block_until_ready(out)

    # Pure-JAX reference for the logits head, mirroring the kernel dtype path
    # (bf16 MXU operands, f32 accumulation / bias / ReLU).
    HW = H * W
    x32 = feat_map.astype(jnp.bfloat16).astype(jnp.float32).reshape(B, C, HW)
    w1t32 = params["w1"].astype(jnp.bfloat16).astype(jnp.float32).T     # [Ch, C]
    w2t32 = params["w2"].astype(jnp.bfloat16).astype(jnp.float32).T     # [A, Ch]
    h = jnp.einsum("oc,bcp->bop", w1t32, x32) + params["b1"][:, None]
    h = jnp.maximum(h, 0.0).astype(jnp.bfloat16).astype(jnp.float32)
    ref_map = (jnp.einsum("oc,bcp->bop", w2t32, h)
               + params["b2"][:, None]).reshape(B, A, H, W)
    assert jnp.allclose(out["logit_map"], ref_map, atol=2e-2, rtol=2e-2)

    # Verify the A-major top-k index remap against a torch-ordered top-k on the
    # same kernel logits (selected sets must match; intra-top-k order is free).
    tl = jnp.transpose(out["logit_map"].reshape(B, A, HW), (0, 2, 1)).reshape(B, HW * A)
    _, ref_rel = lax.top_k(tl, REL_THR)
    ref_sel = (ref_rel + (HW * A) * jnp.arange(B)[:, None]).reshape(-1)
    got = jnp.sort(out["sel_ids"].reshape(B, REL_THR), axis=1)
    want = jnp.sort(ref_sel.reshape(B, REL_THR), axis=1)
    assert jnp.array_equal(got, want)

    assert out["sel_feats"].shape == (B * REL_THR, C)
    assert out["sel_boxes"].shape == (B * REL_THR, 4)
    assert out["anchors"].shape == (HW * A, 4)
    assert jnp.array_equal(out["cum_feats_batch"],
                           jnp.arange(B + 1, dtype=jnp.int32) * REL_THR)

    print("KERNEL_OK")
</pallas_src>

<mosaic_0001>
module attributes {stable_mosaic.version = 11 : i64} {
  func.func @logits_kernel(%arg0: i32, %arg1: i32, %arg2: memref<1x32x256xf32, #tpu.memory_space<vmem>>, %arg3: memref<32x32xbf16, #tpu.memory_space<vmem>>, %arg4: memref<32x1xf32, #tpu.memory_space<vmem>>, %arg5: memref<8x32xbf16, #tpu.memory_space<vmem>>, %arg6: memref<8x1xf32, #tpu.memory_space<vmem>>, %arg7: memref<1x8x256xf32, #tpu.memory_space<vmem>>) attributes {dimension_semantics = [#tpu.dimension_semantics<parallel>, #tpu.dimension_semantics<parallel>], iteration_bounds = array<i64: 2, 1>, scalar_prefetch = 0 : i64, scratch_operands = 0 : i64, tpu.core_type = #tpu.core_type<tc>, window_params = [{transform_indices = @transform_0, window_bounds = array<i64: 1, 32, 256>}, {pipeline_mode = #tpu.pipeline_mode<synchronous>, transform_indices = @transform_1, window_bounds = array<i64: 32, 32>}, {pipeline_mode = #tpu.pipeline_mode<synchronous>, transform_indices = @transform_2, window_bounds = array<i64: 32, 1>}, {pipeline_mode = #tpu.pipeline_mode<synchronous>, transform_indices = @transform_3, window_bounds = array<i64: 8, 32>}, {pipeline_mode = #tpu.pipeline_mode<synchronous>, transform_indices = @transform_4, window_bounds = array<i64: 8, 1>}, {transform_indices = @transform_5, window_bounds = array<i64: 1, 8, 256>}]} {
    %c0 = arith.constant 0 : index
    %c0_0 = arith.constant 0 : index
    %c0_1 = arith.constant 0 : index
    %0 = vector.load %arg2[%c0, %c0_0, %c0_1] : memref<1x32x256xf32, #tpu.memory_space<vmem>>, vector<1x32x256xf32>
    %1 = vector.shape_cast %0 : vector<1x32x256xf32> to vector<32x256xf32>
    %2 = arith.truncf %1 : vector<32x256xf32> to vector<32x256xbf16>
    %c0_2 = arith.constant 0 : index
    %c0_3 = arith.constant 0 : index
    %3 = vector.load %arg3[%c0_2, %c0_3] : memref<32x32xbf16, #tpu.memory_space<vmem>>, vector<32x32xbf16>
    %cst = arith.constant dense<0.000000e+00> : vector<32x256xf32>
    %4 = tpu.matmul %3, %2, %cst {dimension_numbers = #tpu.dot_dimension_numbers<[1], [0], [0], [1], [0, 0, 1, 1], [], []>} : vector<32x32xbf16>, vector<32x256xbf16>, vector<32x256xf32> -> vector<32x256xf32>
    %c0_4 = arith.constant 0 : index
    %c0_5 = arith.constant 0 : index
    %5 = vector.load %arg4[%c0_4, %c0_5] : memref<32x1xf32, #tpu.memory_space<vmem>>, vector<32x1xf32>
    %6 = vector.broadcast %5 : vector<32x1xf32> to vector<32x256xf32>
    %7 = arith.addf %4, %6 : vector<32x256xf32>
    %cst_6 = arith.constant 0.000000e+00 : f32
    %8 = vector.broadcast %cst_6 : f32 to vector<32x256xf32>
    %9 = arith.maximumf %7, %8 : vector<32x256xf32>
    %10 = arith.truncf %9 : vector<32x256xf32> to vector<32x256xbf16>
    %c0_7 = arith.constant 0 : index
    %c0_8 = arith.constant 0 : index
    %11 = vector.load %arg5[%c0_7, %c0_8] : memref<8x32xbf16, #tpu.memory_space<vmem>>, vector<8x32xbf16>
    %cst_9 = arith.constant dense<0.000000e+00> : vector<8x256xf32>
    %12 = tpu.matmul %11, %10, %cst_9 {dimension_numbers = #tpu.dot_dimension_numbers<[1], [0], [0], [1], [0, 0, 1, 1], [], []>} : vector<8x32xbf16>, vector<32x256xbf16>, vector<8x256xf32> -> vector<8x256xf32>
    %c0_10 = arith.constant 0 : index
    %c0_11 = arith.constant 0 : index
    %13 = vector.load %arg6[%c0_10, %c0_11] : memref<8x1xf32, #tpu.memory_space<vmem>>, vector<8x1xf32>
    %14 = vector.broadcast %13 : vector<8x1xf32> to vector<8x256xf32>
    %15 = arith.addf %12, %14 : vector<8x256xf32>
    %c0_12 = arith.constant 0 : index
    %c0_13 = arith.constant 0 : index
    %c0_14 = arith.constant 0 : index
    %16 = vector.load %arg7[%c0_12, %c0_13, %c0_14] : memref<1x8x256xf32, #tpu.memory_space<vmem>>, vector<1x8x256xf32>
    %17 = vector.shape_cast %16 : vector<1x8x256xf32> to vector<8x256xf32>
    %18 = vector.shape_cast %15 : vector<8x256xf32> to vector<1x8x256xf32>
    tpu.vector_store %arg7[%c0_12, %c0_13, %c0_14], %18 {strides = array<i32>} : memref<1x8x256xf32, #tpu.memory_space<vmem>>, vector<1x8x256xf32>,
    return
  }
  func.func @transform_0(%arg0: i32, %arg1: i32) -> (i32, i32, i32) {
    %c0_i32 = arith.constant 0 : i32
    %c0_i32_0 = arith.constant 0 : i32
    return %arg0, %c0_i32, %arg1 : i32, i32, i32
  }
  func.func @transform_1(%arg0: i32, %arg1: i32) -> (i32, i32) {
    %c0_i32 = arith.constant 0 : i32
    %c0_i32_0 = arith.constant 0 : i32
    %c0_i32_1 = arith.constant 0 : i32
    return %c0_i32, %c0_i32_0 : i32, i32
  }
  func.func @transform_2(%arg0: i32, %arg1: i32) -> (i32, i32) {
    %c0_i32 = arith.constant 0 : i32
    %c0_i32_0 = arith.constant 0 : i32
    %c0_i32_1 = arith.constant 0 : i32
    return %c0_i32, %c0_i32_0 : i32, i32
  }
  func.func @transform_3(%arg0: i32, %arg1: i32) -> (i32, i32) {
    %c0_i32 = arith.constant 0 : i32
    %c0_i32_0 = arith.constant 0 : i32
    %c0_i32_1 = arith.constant 0 : i32
    return %c0_i32, %c0_i32_0 : i32, i32
  }
  func.func @transform_4(%arg0: i32, %arg1: i32) -> (i32, i32) {
    %c0_i32 = arith.constant 0 : i32
    %c0_i32_0 = arith.constant 0 : i32
    %c0_i32_1 = arith.constant 0 : i32
    return %c0_i32, %c0_i32_0 : i32, i32
  }
  func.func @transform_5(%arg0: i32, %arg1: i32) -> (i32, i32, i32) {
    %c0_i32 = arith.constant 0 : i32
    %c0_i32_0 = arith.constant 0 : i32
    return %arg0, %c0_i32, %arg1 : i32, i32, i32
  }
}

</mosaic_0001>

<bundles_post_ra>
// kernel: tpu_custom_call.1
= control target key start
LH: loop header
LB: loop body
LE: loop exit
PB: predicated region body
PF: predicated region fallthrough
CT: control target
= control target key end

     0   :  { %10 = vsyncpa [#allocation3], 0  ;;  %s913_s0 = inlined_call_operand.hbm [shape: f32[2,32,256], index: 0, kind: input, shape index: {}]   ;;  %s914_s1 = inlined_call_operand.vmem [shape: bf16[32,32], index: 1, kind: input, shape index: {}]   ;;  %s915_s2 = inlined_call_operand.vmem [shape: f32[32,1], index: 2, kind: input, shape index: {}]   ;;  %s916_s3 = inlined_call_operand.vmem [shape: bf16[8,32], index: 3, kind: input, shape index: {}]   ;;  %s917_s4 = inlined_call_operand.vmem [shape: f32[8,1], index: 4, kind: input, shape index: {}]   ;;  %s918_s5 = inlined_call_operand.hbm [shape: f32[2,8,256], index: 5, kind: output, shape index: {}]  }
   0x1   :  { %12 = vsyncpa [#allocation3 + $0x1], 0 }
   0x2   :  { %13 = vsyncpa [#allocation4], 0 }
   0x3   :  { %15 = vsyncpa [#allocation4 + $0x1], 0  ;;  %s762_s18 = smov 0   ;;  %s764_s19 = smov 0  }
   0x4   :  { %s766_s20 = smov 0   ;;  %s768_s21 = smov 0  }
   0x5   :  { %s770_s22 = smov 0   ;;  %s772_s23 = smov 0  }
   0x6 LB: > { %s514_s24 = sadd.s32 4294967295, %s727_s23   ;;  %s515_s25 = sadd.s32 4294967294, %s727_s23   ;;  %s727_s23 = sphi %s772_s23, %s21_s23   ;;  %s723_s22 = sphi %s770_s22, %s927_s22   ;;  %s719_s21 = sphi %s768_s21, %s926_s21   ;;  %s715_s20 = sphi %s766_s20, %s925_s20   ;;  %s711_s19 = sphi %s764_s19, %s924_s19   ;;  %s707_s18 = sphi %s762_s18, %s923_s18  }
   0x7   : > { %s33_s26 = sadd.s32 1, %s723_s22  ;;  %s42_s27 = sadd.s32 1, %s715_s20 }
   0x8   : > { %p35_p0 = scmp.ge.s32.totalorder %s33_s26, 2  ;;  %p49_p1 = scmp.ne.s32.totalorder %s715_s20, %s711_s19 }
   0x9   : > { %p50_p2 = scmp.eq.s32.totalorder %s727_s23, 0  ;;  %p55_p3 = scmp.ne.s32.totalorder %s711_s19, %s707_s18 }
   0xa   : > { %s929_s26 = smov (%p35_p0, %s33_s26), 0  ;;  %p56_p5 = scmp.eq.s32.totalorder %s514_s24, 0 }
   0xb   : > { %p803_p4 = por %p50_p2, %p49_p1  ;;  %s37_s29 = ssub.s32 %s723_s22, %s929_s26 }
   0xc   : > { %p165_p6 = scmp.eq.s32.totalorder %s514_s24, 1  ;;  %p40_p7 = scmp.eq.s32.totalorder %s37_s29, 0 }
   0xd   : > { %p809_p8 = por %p56_p5, %p55_p3  ;;  %p171_p10 = scmp.eq.s32.totalorder %s515_s25, 1 }
   0xe   : > { %p813_p9 = por %p165_p6, %p49_p1  ;;  %p517_p12 = scmp.ge.s32.totalorder %s727_s23, 2 }
   0xf   : > { %s818_s7 = scalar_select %p40_p7, %s715_s20, %s42_s27  }
  0x10   : > { %p820_p11 = por %p171_p10, %p55_p3  ;;  %p559_p13 = scmp.lt.s32.totalorder %s727_s23, 2 }
  0x11   : > { %s203_s9 = sand.u32 1, %s715_s20   ;;  %s543_s11 = sshll.u32 %s723_s22, 6 }
  0x12   : > { %s518_s10 = sshll.u32 %s203_s9, 6  ;;  %s214_s14 = scalar_lea.hbm %s913_s0, %s543_s11 }
  0x13   : > { %s207_s15 = scalar_lea.vmem [#allocation2], %s518_s10  ;;  %s215_s17 = sshll.u32 %s214_s14, 4  ;;  %s216_s17 = int_to_ptr.hbm [resolvable:$true] %s215_s17 }
  0x14   : > { %s217_s16 = sshll.u32 %s207_s15, 4  ;;  %p552_p0 = pnand %p559_p13, %p803_p4  ;;  %s218_s16 = int_to_ptr.vmem [resolvable:$true] %s217_s16 }
  0x15   : > { %p521_p1 = scmp.ge.s32.totalorder %s727_s23, 1  ;;  %s204_s24 = scalar_lea.sflag [#allocation3], %s203_s9 }
  0x16   : > { %s729_s25 = smov 256   ;;  %s730_s27 = smov 16  }
  0x17   : > { %554 = dma.hbm_to_vmem [thread:$0]  (!%p552_p0), %s216_s17, 1024, %s218_s16, %s204_s24, %s729_s25, %s729_s25, %s730_s27  }
  0x18   : > { %p225_p2 = scmp.lt.s32.totalorder %s727_s23, 3 }
  0x1a   : > { %p226_p3 = pnand %p521_p1, %p225_p2 }
  0x1b   : > { %s836_s29 = sand.u32 (!%p226_p3), 1, %s711_s19  }
  0x1c   : > { %229 = sbr.rel (%p226_p3) target bundleno = 348 (0x15c), region = 40  ;;  %s522_s10 = sshll.u32 (!%p226_p3), %s836_s29, 6 }
  0x1d   : > { %s232_s11 = scalar_lea.sflag (!%p226_p3), [#allocation3], %s836_s29  ;;  %s235_s12 = scalar_lea.vmem (!%p226_p3), [#allocation2], %s522_s10 }
  0x21   : > { %698 = dma.done.wait (%p809_p8), %s232_s11, 1024  }
  0x22   : > { %700 = vsyncadd (%p809_p8), %s232_s11, 4294966272  ;;  %v731_v0 = vmov 0   ;;  %v270_v1 = vld [vmem:[%s235_s12 + $0x20] sm:$0xff]  ;;  %v272_v2 = vld [vmem:[%s235_s12 + $0x30] sm:$0xff]  ;;  %vm316_vm0 = vcmask 261120   ;;  %s546_s30 = sshll.u32 %s719_s21, 4 }
  0x23   : > { %613 = vset.pattern.permute.xlu1 %v731_v0  ;;  %612 = vset.pattern.permute.xlu0 %v731_v0  ;;  %v271_v3 = vld [vmem:[%s235_s12 + $0x28] sm:$0xff]  ;;  %v276_v4 = vpack.c.bf16 %v272_v2, %v270_v1  ;;  %v273_v5 = vld [vmem:[%s235_s12 + $0x38] sm:$0xff]  ;;  %v266_v6 = vld [vmem:[%s235_s12] sm:$0xff]  ;;  %s523_s13 = sshll.u32 %s836_s29, 4  ;;  %s425_s16 = scalar_lea.hbm %s918_s5, %s546_s30 }
  0x24   : > { %614 = vset.pattern.permute.xlu2 %v731_v0  ;;  %v268_v7 = vld [vmem:[%s235_s12 + $0x10] sm:$0xff]  ;;  %v277_v8 = vpack.c.bf16 %v273_v5, %v271_v3  ;;  %v267_v9 = vld [vmem:[%s235_s12 + $0x8] sm:$0xff]  ;;  %v269_v10 = vld [vmem:[%s235_s12 + $0x18] sm:$0xff]  ;;  %s262_s17 = scalar_lea.vmem [#allocation5], %s523_s13  ;;  %s429_s25 = sshll.u32 %s425_s16, 4  ;;  %s430_s25 = int_to_ptr.hbm [resolvable:$true] %s429_s25 }
  0x25   : > { %329 = vmatpush.bf16.msra.mxu0 %v276_v4  ;;  %v274_v11 = vpack.c.bf16 %v268_v7, %v266_v6  ;;  %v282_v12 = vld [vmem:[%s915_s2] sm:$0xff]  ;;  %v284_v13 = vld [vmem:[%s915_s2 + $0x10] sm:$0xff]  ;;  %v275_v14 = vpack.c.bf16 %v269_v10, %v267_v9  ;;  %v283_v16 = vld [vmem:[%s915_s2 + $0x8] sm:$0xff]  ;;  %s427_s24 = sshll.u32 %s262_s17, 4  ;;  %s412_s27 = scalar_lea.sflag [#allocation4], %s836_s29  ;;  %s428_s24 = int_to_ptr.vmem [resolvable:$true] %s427_s24 }
  0x26   : > { %348 = vmatpush.bf16.msra.mxu1 %v277_v8  ;;  %288 = vperm.xlu1 %613, %v282_v12   ;;  %v544_v15 = vld [vmem:[%s914_s1] sm:$0xff]  ;;  %v285_v17 = vld [vmem:[%s915_s2 + $0x18] sm:$0xff]  ;;  %v545_v18 = vld [vmem:[%s914_s1 + $0x8] sm:$0xff]  ;;  %s659_s21 = sshra.s32 %s430_s25, 4  ;;  %s665_s28 = scalar_lea.hbm %s918_s5, 32  ;;  %s660_s21 = int_to_ptr.hbm [resolvable:$true] %s659_s21 }
  0x27   : > { %298 = vperm.xlu0 %612, %v284_v13   ;;  %v374_v21 = vld [vmem:[%s917_s4] sm:$0xff]  ;;  %s661_s10 = scalar_lea.hbm %s660_s21, 16  ;;  %p666_p7 = scmp.lt.s32.totalorder %s660_s21, %s918_s5 }
  0x28   : > { %377 = vperm.xlu2 %614, %v374_v21   ;;  %v373_v52 = vld [vmem:[%s916_s3] sm:$0xf]  ;;  %p662_p4 = scmp.ne.s32.totalorder %s660_s21, %s661_s10  ;;  %p667_p8 = scmp.lt.s32.totalorder %s665_s28, %s661_s10 }
  0x29   : > { %330 = vmatpush.bf16.msra.mxu0 %v274_v11 }
  0x2a   : > { %349 = vmatpush.bf16.msra.mxu1 %v275_v14  ;;  %p663_p5 = pnand %p662_p4, %p813_p9  ;;  %p668_p10 = por %p667_p8, %p666_p7 }
  0x2c   : > { %532 = vmatmul.msk.bf16.vlgmr.msra.gmra.mxu0 %vm316_vm0, %v544_v15  ;;  %p664_p6 = pneg %p663_p5 }
  0x2d   : > { %534 = vmatmul.msk.bf16.vlgmr.msra.gmra.mxu1 %vm316_vm0, %v544_v15 }
  0x2e   : > { %293 = vperm.xlu1 %613, %v283_v16   ;;  %p669_p13 = pnand %p668_p10, %p664_p6 }
  0x2f   : > { %303 = vperm.xlu0 %612, %v285_v17  }
  0x3c   : > { %533 = vmatmul.msk.bf16.gmra.mxu0 %vm316_vm0, %v545_v18 }
  0x3d   : > { %535 = vmatmul.msk.bf16.gmra.mxu1 %vm316_vm0, %v545_v18 }
  0x82   : > { %v378_v53 = vpop.permute.xlu2 %377 }
  0x98   : > { %v289_v24 = vpop.permute.xlu1 %288 }
  0x99   : > { %v299_v25 = vpop.permute.xlu0 %298 }
  0xa0   : > { %v294_v28 = vpop.permute.xlu1 %293 }
  0xa1   : > { %v304_v30 = vpop.permute.xlu0 %303 }
  0xa9   : > { %v332_v19 = vpop.f32.mrf.mxu0 }
  0xaa   : > { %v351_v20 = vpop.f32.mrf.mxu1  ;;  %v333_v38 = vadd.f32 %v332_v19, %v289_v24 }
  0xab   : > { %v352_v41 = vadd.f32 %v351_v20, %v289_v24 }
  0xac   : > { %v361_v48 = vmax.f32 %v333_v38, 0.0 }
  0xad   : > { %v362_v49 = vmax.f32 %v352_v41, 0.0 }
  0xb1   : > { %v334_v22 = vpop.f32.mrf.mxu0 }
  0xb2   : > { %v353_v23 = vpop.f32.mrf.mxu1  ;;  %v335_v33 = vadd.f32 %v334_v22, %v294_v28 }
  0xb3   : > { %v354_v36 = vadd.f32 %v353_v23, %v294_v28 }
  0xb4   : > { %v363_v44 = vmax.f32 %v335_v33, 0.0 }
  0xb5   : > { %v364_v46 = vmax.f32 %v354_v36, 0.0 }
  0xb6   : > { %v369_v50 = vpack.c.bf16 %v363_v44, %v361_v48 }
  0xb7   : > { %v370_v51 = vpack.c.bf16 %v364_v46, %v362_v49 }
  0xb9   : > { %v337_v26 = vpop.f32.mrf.mxu0 }
  0xba   : > { %v356_v27 = vpop.f32.mrf.mxu1  ;;  %v338_v29 = vadd.f32 %v337_v26, %v299_v25 }
  0xbb   : > { %v357_v31 = vadd.f32 %v356_v27, %v299_v25 }
  0xbc   : > { %v365_v39 = vmax.f32 %v338_v29, 0.0 }
  0xbd   : > { %v366_v42 = vmax.f32 %v357_v31, 0.0 }
  0xc1   : > { %v339_v32 = vpop.f32.mrf.mxu0 }
  0xc2   : > { %v340_v34 = vadd.f32 %v339_v32, %v304_v30  ;;  %v358_v35 = vpop.f32.mrf.mxu1 }
  0xc3   : > { %v359_v37 = vadd.f32 %v358_v35, %v304_v30 }
  0xc4   : > { %v367_v40 = vmax.f32 %v340_v34, 0.0 }
  0xc5   : > { %v368_v43 = vmax.f32 %v359_v37, 0.0 }
  0xc6   : > { %v371_v45 = vpack.c.bf16 %v367_v40, %v365_v39 }
  0xc7   : > { %v372_v47 = vpack.c.bf16 %v368_v43, %v366_v42 }
  0xc8   : > { %389 = vmatpush.bf16.msra.mxu2 %v371_v45 }
  0xc9   : > { %402 = vmatpush.bf16.msra.mxu3 %v372_v47 }
  0xcc   : > { %390 = vmatpush.bf16.msra.mxu2 %v369_v50 }
  0xcd   : > { %403 = vmatpush.bf16.msra.mxu3 %v370_v51 }
  0xcf   : > { %536 = vmatmul.msk.bf16.vlgmr.msra.gmra.mxu2 %vm316_vm0, %v373_v52 }
  0xd0   : > { %537 = vmatmul.msk.bf16.vlgmr.msra.gmra.mxu3 %vm316_vm0, %v373_v52 }
 0x152   : > { %v392_v54 = vpop.f32.mrf.mxu2 }
 0x153   : > { %v393_v55 = vadd.f32 %v392_v54, %v378_v53  ;;  %v405_v56 = vpop.f32.mrf.mxu3 }
 0x154   : > { %v406_v57 = vadd.f32 %v405_v56, %v378_v53 }
 0x155   : > { %409 = vst [vmem:[%s262_s17] sm:$0xff] %v393_v55 }
 0x156   : > { %410 = vst [vmem:[%s262_s17 + $0x8] sm:$0xff] %v406_v57 }
 0x157   : > { %672 = shalt.err (!%p669_p13)
}
 0x158   : > { %549 = dma.vmem_to_hbm [thread:$0]  (%p813_p9), %s428_s24, 256, %s430_s25, %s412_s27  }
 0x15a   : > { %v394_v58 = vpop.f32.mrf.mxu2 }
 0x15b   : > { %v407_v59 = vpop.f32.mrf.mxu3 }
 0x15c PF: > { %s441_s29 = sand.u32 1, %s707_s18   ;;  %p556_p0 = pnand %p517_p12, %p820_p11 }
 0x15d   : > { %s442_s13 = scalar_lea.sflag [#allocation4], %s441_s29 }
 0x15e   : > { %p557_p1 = pneg %p556_p0 }
 0x160   : > { %702 = dma.done.wait (%p557_p1), %s442_s13, 256  }
 0x161   : > { %704 = vsyncadd (%p557_p1), %s442_s13, 4294967040  ;;  %s21_s23 = sadd.s32 1, %s727_s23   ;;  %s923_s18 = smov %s711_s19 }
 0x162   : > { %p18_p2 = scmp.ge.s32.totalorder %s21_s23, 4   ;;  %s924_s19 = smov %s715_s20 }
 0x163   : > { %s925_s20 = smov %s818_s7  ;;  %s926_s21 = smov %s723_s22 }
 0x164   : > { %s927_s22 = smov %s929_s26  ;;  %20 = sbr.rel (!%p18_p2) target bundleno = 6 (0x6), region = 85 }
 0x169   :  { %448 = vsyncpa [#allocation3], 1 }
 0x16a   :  { %450 = vsyncpa [#allocation3 + $0x1], 1 }
 0x16b   :  { %451 = vsyncpa [#allocation4], 1 }
 0x16c   :  { %453 = vsyncpa [#allocation4 + $0x1], 1 }

</bundles_post_ra>
